<compile_context>
chip_gen: v7x
topology: tpu7x:2x2x1
jax: 0.10.0
libtpu: 0.0.40
codegen_flags: <defaults>
</compile_context>

<pallas_src>
import functools

import numpy as np
import jax
import jax.numpy as jnp
from jax.experimental import pallas as pl
from jax.experimental.pallas import tpu as pltpu


def _ghm_partials_kernel(x_ref, t_ref, out_ref, *, bins, rows, tile_rows, ragged):
    step = pl.program_id(0)

    x = x_ref[...].astype(jnp.float32)
    t = t_ref[...].astype(jnp.float32)

    # sigmoid(x) = 0.5 + 0.5*tanh(x/2); log1p(exp(-|x|)) = -log(0.5*(1+|tanh(x/2)|)).
    # One tanh + one log on the EUP, no VALU divide, numerically stable.
    th = jnp.tanh(0.5 * x)
    sig = 0.5 + 0.5 * th
    per = jnp.maximum(x, 0.0) - x * t - jnp.log(0.5 + 0.5 * jnp.abs(th))

    # GHM-C gradient norm g = |sigmoid(x) - t| and float bin index
    # floor(g * (bins - 1e-4))  (no int cast needed).
    g = jnp.abs(sig - t)
    bin_f = jnp.floor(g * (bins - 0.0001))

    if ragged:
        # Statically emitted only when rows % tile_rows != 0.  NaN-safe: the
        # garbage rows of the overrunning last tile go through jnp.where
        # selects (never a multiply), so Inf/NaN cannot poison the sums.
        row = jax.lax.broadcasted_iota(jnp.int32, x.shape, 0)
        valid = row < (rows - step * tile_rows)
        bin_f = jnp.where(valid, bin_f, -1.0)
        per = jnp.where(valid, per, 0.0)

    # Per-bin partials kept per class lane as (1, L) lane-dense rows (pure VPU
    # adds + one cheap sublane reduce each).  The last bin is derived from the
    # totals at finalize time, so only bins-1 masked passes are needed.
    cnt_rows, sum_rows = [], []
    for i in range(bins - 1):
        m = bin_f == float(i)
        cnt_rows.append(jnp.sum(jnp.where(m, 1.0, 0.0), axis=0, keepdims=True))
        sum_rows.append(jnp.sum(jnp.where(m, per, 0.0), axis=0, keepdims=True))
    tot_row = jnp.sum(per, axis=0, keepdims=True)
    out_ref[0] = jnp.concatenate(cnt_rows + sum_rows + [tot_row], axis=0)


def _lane_dense_view(a):
    """Free (bitcast) reshape to a lane-dense slab; never a padded copy."""
    n, c = a.shape
    total = n * c
    if c % 128 == 0:
        return a
    if total % 128 == 0:
        return a.reshape(total // 128, 128)
    return a  # fallback: block class dim == full dim, Mosaic lane-pads internally


@functools.partial(jax.jit, static_argnames=("bins", "alpha", "tile_rows"))
def ghm_forward(x, target, last_bin_count, has_last, *, bins, alpha, tile_rows=1024):
    n, c = x.shape
    total = n * c

    xv = _lane_dense_view(x)
    tv = _lane_dense_view(target)
    rows, lanes = xv.shape

    # Tile sizing: budget ~12 MiB for (2 inputs x 2 pipeline buffers + ~10 live
    # full-tile f32 temporaries) so the working set fits every generation's
    # scoped VMEM; explicit vmem_limit_bytes below.
    budget = 12 * 1024 * 1024
    cap = max(8, (budget // (56 * lanes)) // 8 * 8)
    tr = max(8, (min(int(tile_rows), cap) // 8) * 8)
    if tr >= rows:
        tr = rows
    grid = pl.cdiv(rows, tr)
    ragged = (rows % tr) != 0
    n_out_rows = 2 * bins - 1

    kernel = functools.partial(_ghm_partials_kernel, bins=bins, rows=rows,
                               tile_rows=tr, ragged=ragged)

    partials = pl.pallas_call(
        kernel,
        out_shape=jax.ShapeDtypeStruct((grid, n_out_rows, lanes), jnp.float32),
        grid=(grid,),
        in_specs=[
            pl.BlockSpec((tr, lanes), lambda i: (i, 0)),        # x tile
            pl.BlockSpec((tr, lanes), lambda i: (i, 0)),        # target tile
        ],
        out_specs=pl.BlockSpec((1, n_out_rows, lanes), lambda i: (i, 0, 0)),
        compiler_params=pltpu.CompilerParams(
            dimension_semantics=("parallel",),                  # 2 TCs on v7x
            vmem_limit_bytes=32 * 1024 * 1024),
    )(xv, tv)

    # Tiny finalize in plain JAX on the (grid, 2*bins-1, lanes) partials:
    # EMA over bin counts, nonempty bins, beta weighting, mean loss.
    p = jnp.sum(partials, axis=(0, 2))                          # (2*bins-1,)
    n_total = jnp.float32(total)                                # N = x.size(0)*x.size(1)
    cnt_head = p[:bins - 1]
    sum_head = p[bins - 1:2 * bins - 2]
    tot_sum = p[2 * bins - 2]
    bin_count = jnp.concatenate([cnt_head, (n_total - jnp.sum(cnt_head))[None]])
    loss_sums = jnp.concatenate([sum_head, (tot_sum - jnp.sum(sum_head))[None]])

    ema = alpha * last_bin_count + (1.0 - alpha) * bin_count
    bin_count = jnp.where(has_last > 0, ema, bin_count)

    nonempty = jnp.sum((bin_count > 0.0).astype(jnp.float32))
    gd = jnp.maximum(bin_count * nonempty, 0.0001)
    beta = n_total / gd
    loss = jnp.sum(beta * loss_sums) / n_total
    return loss, bin_count


class GHMCLossPallas:
    """GHM_Loss (GHM-C) with the elementwise/histogram hot path in Pallas."""

    def __init__(self, bins, alpha, tile_rows=1024):
        self._bins = bins
        self._alpha = float(alpha)
        self._tile_rows = int(tile_rows)
        self._last_bin_count = None   # python-side EMA state, like the nn.Module

    def __call__(self, x, target):
        if self._last_bin_count is None:
            last = jnp.zeros((self._bins,), jnp.float32)
            has = jnp.zeros((1,), jnp.int32)
        else:
            last = self._last_bin_count
            has = jnp.ones((1,), jnp.int32)
        loss, new_bc = ghm_forward(x, target, last, has, bins=self._bins,
                                   alpha=self._alpha, tile_rows=self._tile_rows)
        self._last_bin_count = new_bc
        return loss


def ghm_reference(x, target, last_bc, has_last, bins, alpha):
    """Pure-JAX reference of the same forward semantics (the torch spec)."""
    g = jnp.abs(jax.nn.sigmoid(x) - target)
    bin_idx = jnp.floor(g * (bins - 0.0001)).astype(jnp.int32)
    bin_count = jnp.stack(
        [jnp.sum(bin_idx == i).astype(jnp.float32) for i in range(bins)])
    if has_last:
        bin_count = alpha * last_bc + (1.0 - alpha) * bin_count
    N = x.shape[0] * x.shape[1]
    nonempty = jnp.sum(bin_count > 0).astype(jnp.float32)
    gd = jnp.clip(bin_count * nonempty, 0.0001, None)
    beta = N / gd
    w = beta[bin_idx]
    per = jnp.maximum(x, 0.0) - x * target + jnp.log1p(jnp.exp(-jnp.abs(x)))
    return jnp.mean(w * per), bin_count


if __name__ == "__main__":
    key = jax.random.PRNGKey(0)
    kx1, kt1, kx2, kt2, kx3, kt3 = jax.random.split(key, 6)
    bins, alpha = 10, 0.75

    # Config A: C not a multiple of 128 -> free lane-dense reshape path
    # ((24*96) -> (18, 128)); tile_rows=8 -> grid of 3 with a ragged
    # (masked) last tile.  Two calls exercise the EMA state.
    B, C = 24, 96
    x1 = jax.random.normal(kx1, (B, C), jnp.float32)
    t1 = jax.random.bernoulli(kt1, 0.5, (B, C)).astype(jnp.float32)
    x2 = jax.random.normal(kx2, (B, C), jnp.float32) * 2.0
    t2 = jax.random.bernoulli(kt2, 0.3, (B, C)).astype(jnp.float32)

    ghm = GHMCLossPallas(bins=bins, alpha=alpha, tile_rows=8)

    loss1 = ghm(x1, t1)
    jax.block_until_ready(loss1)
    ref1, ref_bc1 = ghm_reference(x1, t1, jnp.zeros((bins,), jnp.float32),
                                  False, bins, alpha)
    np.testing.assert_allclose(np.asarray(loss1), np.asarray(ref1),
                               rtol=2e-3, atol=1e-5)
    np.testing.assert_allclose(np.asarray(ghm._last_bin_count),
                               np.asarray(ref_bc1), rtol=1e-4, atol=1e-3)

    loss2 = ghm(x2, t2)
    jax.block_until_ready(loss2)
    ref2, _ = ghm_reference(x2, t2, ref_bc1, True, bins, alpha)
    np.testing.assert_allclose(np.asarray(loss2), np.asarray(ref2),
                               rtol=2e-3, atol=1e-5)

    # Config B: C a multiple of 128 -> native (N, C) lane-dense path, grid=1.
    B2, C2 = 16, 128
    x3 = jax.random.normal(kx3, (B2, C2), jnp.float32)
    t3 = jax.random.bernoulli(kt3, 0.4, (B2, C2)).astype(jnp.float32)
    ghm2 = GHMCLossPallas(bins=bins, alpha=alpha)
    loss3 = ghm2(x3, t3)
    jax.block_until_ready(loss3)
    ref3, ref_bc3 = ghm_reference(x3, t3, jnp.zeros((bins,), jnp.float32),
                                  False, bins, alpha)
    np.testing.assert_allclose(np.asarray(loss3), np.asarray(ref3),
                               rtol=2e-3, atol=1e-5)
    np.testing.assert_allclose(np.asarray(ghm2._last_bin_count),
                               np.asarray(ref_bc3), rtol=1e-4, atol=1e-3)

    print("KERNEL_OK")
</pallas_src>

<mosaic_0001>
module attributes {stable_mosaic.version = 11 : i64} {
  func.func @_ghm_partials_kernel(%arg0: i32, %arg1: memref<8x128xf32, #tpu.memory_space<vmem>>, %arg2: memref<8x128xf32, #tpu.memory_space<vmem>>, %arg3: memref<1x19x128xf32, #tpu.memory_space<vmem>>) attributes {dimension_semantics = [#tpu.dimension_semantics<parallel>], iteration_bounds = array<i64: 3>, scalar_prefetch = 0 : i64, scratch_operands = 0 : i64, tpu.core_type = #tpu.core_type<tc>, window_params = [{transform_indices = @transform_0, window_bounds = array<i64: 8, 128>}, {transform_indices = @transform_1, window_bounds = array<i64: 8, 128>}, {transform_indices = @transform_2, window_bounds = array<i64: 1, 19, 128>}]} {
    %c0 = arith.constant 0 : index
    %c0_0 = arith.constant 0 : index
    %0 = vector.load %arg1[%c0, %c0_0] : memref<8x128xf32, #tpu.memory_space<vmem>>, vector<8x128xf32>
    %c0_1 = arith.constant 0 : index
    %c0_2 = arith.constant 0 : index
    %1 = vector.load %arg2[%c0_1, %c0_2] : memref<8x128xf32, #tpu.memory_space<vmem>>, vector<8x128xf32>
    %cst = arith.constant 5.000000e-01 : f32
    %2 = vector.broadcast %cst : f32 to vector<8x128xf32>
    %3 = arith.mulf %2, %0 : vector<8x128xf32>
    %4 = math.tanh %3 : vector<8x128xf32>
    %cst_3 = arith.constant 5.000000e-01 : f32
    %5 = vector.broadcast %cst_3 : f32 to vector<8x128xf32>
    %6 = arith.mulf %5, %4 : vector<8x128xf32>
    %cst_4 = arith.constant 5.000000e-01 : f32
    %7 = vector.broadcast %cst_4 : f32 to vector<8x128xf32>
    %8 = arith.addf %7, %6 : vector<8x128xf32>
    %cst_5 = arith.constant 0.000000e+00 : f32
    %9 = vector.broadcast %cst_5 : f32 to vector<8x128xf32>
    %10 = arith.maximumf %0, %9 : vector<8x128xf32>
    %11 = arith.mulf %0, %1 : vector<8x128xf32>
    %12 = arith.subf %10, %11 : vector<8x128xf32>
    %13 = math.absf %4 : vector<8x128xf32>
    %cst_6 = arith.constant 5.000000e-01 : f32
    %14 = vector.broadcast %cst_6 : f32 to vector<8x128xf32>
    %15 = arith.mulf %14, %13 : vector<8x128xf32>
    %cst_7 = arith.constant 5.000000e-01 : f32
    %16 = vector.broadcast %cst_7 : f32 to vector<8x128xf32>
    %17 = arith.addf %16, %15 : vector<8x128xf32>
    %18 = math.log %17 : vector<8x128xf32>
    %19 = arith.subf %12, %18 : vector<8x128xf32>
    %20 = arith.subf %8, %1 : vector<8x128xf32>
    %21 = math.absf %20 : vector<8x128xf32>
    %cst_8 = arith.constant 9.99989986 : f32
    %22 = vector.broadcast %cst_8 : f32 to vector<8x128xf32>
    %23 = arith.mulf %21, %22 : vector<8x128xf32>
    %24 = math.floor %23 : vector<8x128xf32>
    %25 = tpu.iota {dimensions = array<i32: 0>} : vector<8x128xi32>
    %c8_i32 = arith.constant 8 : i32
    %26 = arith.muli %arg0, %c8_i32 : i32
    %c18_i32 = arith.constant 18 : i32
    %27 = arith.subi %c18_i32, %26 : i32
    %28 = vector.broadcast %27 : i32 to vector<8x128xi32>
    %29 = arith.cmpi slt, %25, %28 : vector<8x128xi32>
    %cst_9 = arith.constant -1.000000e+00 : f32
    %30 = vector.broadcast %cst_9 : f32 to vector<8x128xf32>
    %31 = arith.select %29, %24, %30 : vector<8x128xi1>, vector<8x128xf32>
    %cst_10 = arith.constant 0.000000e+00 : f32
    %32 = vector.broadcast %cst_10 : f32 to vector<8x128xf32>
    %33 = arith.select %29, %19, %32 : vector<8x128xi1>, vector<8x128xf32>
    %cst_11 = arith.constant 0.000000e+00 : f32
    %34 = vector.broadcast %cst_11 : f32 to vector<8x128xf32>
    %35 = arith.cmpf oeq, %31, %34 : vector<8x128xf32>
    %cst_12 = arith.constant 1.000000e+00 : f32
    %cst_13 = arith.constant 0.000000e+00 : f32
    %36 = vector.broadcast %cst_12 : f32 to vector<8x128xf32>
    %37 = vector.broadcast %cst_13 : f32 to vector<8x128xf32>
    %38 = arith.select %35, %36, %37 : vector<8x128xi1>, vector<8x128xf32>
    %cst_14 = arith.constant dense<0.000000e+00> : vector<128xf32>
    %39 = vector.multi_reduction <add>, %38, %cst_14 [0] : vector<8x128xf32> to vector<128xf32>
    %40 = vector.shape_cast %39 : vector<128xf32> to vector<1x128xf32>
    %cst_15 = arith.constant 0.000000e+00 : f32
    %41 = vector.broadcast %cst_15 : f32 to vector<8x128xf32>
    %42 = arith.select %35, %33, %41 : vector<8x128xi1>, vector<8x128xf32>
    %cst_16 = arith.constant dense<0.000000e+00> : vector<128xf32>
    %43 = vector.multi_reduction <add>, %42, %cst_16 [0] : vector<8x128xf32> to vector<128xf32>
    %44 = vector.shape_cast %43 : vector<128xf32> to vector<1x128xf32>
    %cst_17 = arith.constant 1.000000e+00 : f32
    %45 = vector.broadcast %cst_17 : f32 to vector<8x128xf32>
    %46 = arith.cmpf oeq, %31, %45 : vector<8x128xf32>
    %cst_18 = arith.constant 1.000000e+00 : f32
    %cst_19 = arith.constant 0.000000e+00 : f32
    %47 = vector.broadcast %cst_18 : f32 to vector<8x128xf32>
    %48 = vector.broadcast %cst_19 : f32 to vector<8x128xf32>
    %49 = arith.select %46, %47, %48 : vector<8x128xi1>, vector<8x128xf32>
    %cst_20 = arith.constant dense<0.000000e+00> : vector<128xf32>
    %50 = vector.multi_reduction <add>, %49, %cst_20 [0] : vector<8x128xf32> to vector<128xf32>
    %51 = vector.shape_cast %50 : vector<128xf32> to vector<1x128xf32>
    %cst_21 = arith.constant 0.000000e+00 : f32
    %52 = vector.broadcast %cst_21 : f32 to vector<8x128xf32>
    %53 = arith.select %46, %33, %52 : vector<8x128xi1>, vector<8x128xf32>
    %cst_22 = arith.constant dense<0.000000e+00> : vector<128xf32>
    %54 = vector.multi_reduction <add>, %53, %cst_22 [0] : vector<8x128xf32> to vector<128xf32>
    %55 = vector.shape_cast %54 : vector<128xf32> to vector<1x128xf32>
    %cst_23 = arith.constant 2.000000e+00 : f32
    %56 = vector.broadcast %cst_23 : f32 to vector<8x128xf32>
    %57 = arith.cmpf oeq, %31, %56 : vector<8x128xf32>
    %cst_24 = arith.constant 1.000000e+00 : f32
    %cst_25 = arith.constant 0.000000e+00 : f32
    %58 = vector.broadcast %cst_24 : f32 to vector<8x128xf32>
    %59 = vector.broadcast %cst_25 : f32 to vector<8x128xf32>
    %60 = arith.select %57, %58, %59 : vector<8x128xi1>, vector<8x128xf32>
    %cst_26 = arith.constant dense<0.000000e+00> : vector<128xf32>
    %61 = vector.multi_reduction <add>, %60, %cst_26 [0] : vector<8x128xf32> to vector<128xf32>
    %62 = vector.shape_cast %61 : vector<128xf32> to vector<1x128xf32>
    %cst_27 = arith.constant 0.000000e+00 : f32
    %63 = vector.broadcast %cst_27 : f32 to vector<8x128xf32>
    %64 = arith.select %57, %33, %63 : vector<8x128xi1>, vector<8x128xf32>
    %cst_28 = arith.constant dense<0.000000e+00> : vector<128xf32>
    %65 = vector.multi_reduction <add>, %64, %cst_28 [0] : vector<8x128xf32> to vector<128xf32>
    %66 = vector.shape_cast %65 : vector<128xf32> to vector<1x128xf32>
    %cst_29 = arith.constant 3.000000e+00 : f32
    %67 = vector.broadcast %cst_29 : f32 to vector<8x128xf32>
    %68 = arith.cmpf oeq, %31, %67 : vector<8x128xf32>
    %cst_30 = arith.constant 1.000000e+00 : f32
    %cst_31 = arith.constant 0.000000e+00 : f32
    %69 = vector.broadcast %cst_30 : f32 to vector<8x128xf32>
    %70 = vector.broadcast %cst_31 : f32 to vector<8x128xf32>
    %71 = arith.select %68, %69, %70 : vector<8x128xi1>, vector<8x128xf32>
    %cst_32 = arith.constant dense<0.000000e+00> : vector<128xf32>
    %72 = vector.multi_reduction <add>, %71, %cst_32 [0] : vector<8x128xf32> to vector<128xf32>
    %73 = vector.shape_cast %72 : vector<128xf32> to vector<1x128xf32>
    %cst_33 = arith.constant 0.000000e+00 : f32
    %74 = vector.broadcast %cst_33 : f32 to vector<8x128xf32>
    %75 = arith.select %68, %33, %74 : vector<8x128xi1>, vector<8x128xf32>
    %cst_34 = arith.constant dense<0.000000e+00> : vector<128xf32>
    %76 = vector.multi_reduction <add>, %75, %cst_34 [0] : vector<8x128xf32> to vector<128xf32>
    %77 = vector.shape_cast %76 : vector<128xf32> to vector<1x128xf32>
    %cst_35 = arith.constant 4.000000e+00 : f32
    %78 = vector.broadcast %cst_35 : f32 to vector<8x128xf32>
    %79 = arith.cmpf oeq, %31, %78 : vector<8x128xf32>
    %cst_36 = arith.constant 1.000000e+00 : f32
    %cst_37 = arith.constant 0.000000e+00 : f32
    %80 = vector.broadcast %cst_36 : f32 to vector<8x128xf32>
    %81 = vector.broadcast %cst_37 : f32 to vector<8x128xf32>
    %82 = arith.select %79, %80, %81 : vector<8x128xi1>, vector<8x128xf32>
    %cst_38 = arith.constant dense<0.000000e+00> : vector<128xf32>
    %83 = vector.multi_reduction <add>, %82, %cst_38 [0] : vector<8x128xf32> to vector<128xf32>
    %84 = vector.shape_cast %83 : vector<128xf32> to vector<1x128xf32>
    %cst_39 = arith.constant 0.000000e+00 : f32
    %85 = vector.broadcast %cst_39 : f32 to vector<8x128xf32>
    %86 = arith.select %79, %33, %85 : vector<8x128xi1>, vector<8x128xf32>
    %cst_40 = arith.constant dense<0.000000e+00> : vector<128xf32>
    %87 = vector.multi_reduction <add>, %86, %cst_40 [0] : vector<8x128xf32> to vector<128xf32>
    %88 = vector.shape_cast %87 : vector<128xf32> to vector<1x128xf32>
    %cst_41 = arith.constant 5.000000e+00 : f32
    %89 = vector.broadcast %cst_41 : f32 to vector<8x128xf32>
    %90 = arith.cmpf oeq, %31, %89 : vector<8x128xf32>
    %cst_42 = arith.constant 1.000000e+00 : f32
    %cst_43 = arith.constant 0.000000e+00 : f32
    %91 = vector.broadcast %cst_42 : f32 to vector<8x128xf32>
    %92 = vector.broadcast %cst_43 : f32 to vector<8x128xf32>
    %93 = arith.select %90, %91, %92 : vector<8x128xi1>, vector<8x128xf32>
    %cst_44 = arith.constant dense<0.000000e+00> : vector<128xf32>
    %94 = vector.multi_reduction <add>, %93, %cst_44 [0] : vector<8x128xf32> to vector<128xf32>
    %95 = vector.shape_cast %94 : vector<128xf32> to vector<1x128xf32>
    %cst_45 = arith.constant 0.000000e+00 : f32
    %96 = vector.broadcast %cst_45 : f32 to vector<8x128xf32>
    %97 = arith.select %90, %33, %96 : vector<8x128xi1>, vector<8x128xf32>
    %cst_46 = arith.constant dense<0.000000e+00> : vector<128xf32>
    %98 = vector.multi_reduction <add>, %97, %cst_46 [0] : vector<8x128xf32> to vector<128xf32>
    %99 = vector.shape_cast %98 : vector<128xf32> to vector<1x128xf32>
    %cst_47 = arith.constant 6.000000e+00 : f32
    %100 = vector.broadcast %cst_47 : f32 to vector<8x128xf32>
    %101 = arith.cmpf oeq, %31, %100 : vector<8x128xf32>
    %cst_48 = arith.constant 1.000000e+00 : f32
    %cst_49 = arith.constant 0.000000e+00 : f32
    %102 = vector.broadcast %cst_48 : f32 to vector<8x128xf32>
    %103 = vector.broadcast %cst_49 : f32 to vector<8x128xf32>
    %104 = arith.select %101, %102, %103 : vector<8x128xi1>, vector<8x128xf32>
    %cst_50 = arith.constant dense<0.000000e+00> : vector<128xf32>
    %105 = vector.multi_reduction <add>, %104, %cst_50 [0] : vector<8x128xf32> to vector<128xf32>
    %106 = vector.shape_cast %105 : vector<128xf32> to vector<1x128xf32>
    %cst_51 = arith.constant 0.000000e+00 : f32
    %107 = vector.broadcast %cst_51 : f32 to vector<8x128xf32>
    %108 = arith.select %101, %33, %107 : vector<8x128xi1>, vector<8x128xf32>
    %cst_52 = arith.constant dense<0.000000e+00> : vector<128xf32>
    %109 = vector.multi_reduction <add>, %108, %cst_52 [0] : vector<8x128xf32> to vector<128xf32>
    %110 = vector.shape_cast %109 : vector<128xf32> to vector<1x128xf32>
    %cst_53 = arith.constant 7.000000e+00 : f32
    %111 = vector.broadcast %cst_53 : f32 to vector<8x128xf32>
    %112 = arith.cmpf oeq, %31, %111 : vector<8x128xf32>
    %cst_54 = arith.constant 1.000000e+00 : f32
    %cst_55 = arith.constant 0.000000e+00 : f32
    %113 = vector.broadcast %cst_54 : f32 to vector<8x128xf32>
    %114 = vector.broadcast %cst_55 : f32 to vector<8x128xf32>
    %115 = arith.select %112, %113, %114 : vector<8x128xi1>, vector<8x128xf32>
    %cst_56 = arith.constant dense<0.000000e+00> : vector<128xf32>
    %116 = vector.multi_reduction <add>, %115, %cst_56 [0] : vector<8x128xf32> to vector<128xf32>
    %117 = vector.shape_cast %116 : vector<128xf32> to vector<1x128xf32>
    %cst_57 = arith.constant 0.000000e+00 : f32
    %118 = vector.broadcast %cst_57 : f32 to vector<8x128xf32>
    %119 = arith.select %112, %33, %118 : vector<8x128xi1>, vector<8x128xf32>
    %cst_58 = arith.constant dense<0.000000e+00> : vector<128xf32>
    %120 = vector.multi_reduction <add>, %119, %cst_58 [0] : vector<8x128xf32> to vector<128xf32>
    %121 = vector.shape_cast %120 : vector<128xf32> to vector<1x128xf32>
    %cst_59 = arith.constant 8.000000e+00 : f32
    %122 = vector.broadcast %cst_59 : f32 to vector<8x128xf32>
    %123 = arith.cmpf oeq, %31, %122 : vector<8x128xf32>
    %cst_60 = arith.constant 1.000000e+00 : f32
    %cst_61 = arith.constant 0.000000e+00 : f32
    %124 = vector.broadcast %cst_60 : f32 to vector<8x128xf32>
    %125 = vector.broadcast %cst_61 : f32 to vector<8x128xf32>
    %126 = arith.select %123, %124, %125 : vector<8x128xi1>, vector<8x128xf32>
    %cst_62 = arith.constant dense<0.000000e+00> : vector<128xf32>
    %127 = vector.multi_reduction <add>, %126, %cst_62 [0] : vector<8x128xf32> to vector<128xf32>
    %128 = vector.shape_cast %127 : vector<128xf32> to vector<1x128xf32>
    %cst_63 = arith.constant 0.000000e+00 : f32
    %129 = vector.broadcast %cst_63 : f32 to vector<8x128xf32>
    %130 = arith.select %123, %33, %129 : vector<8x128xi1>, vector<8x128xf32>
    %cst_64 = arith.constant dense<0.000000e+00> : vector<128xf32>
    %131 = vector.multi_reduction <add>, %130, %cst_64 [0] : vector<8x128xf32> to vector<128xf32>
    %132 = vector.shape_cast %131 : vector<128xf32> to vector<1x128xf32>
    %cst_65 = arith.constant dense<0.000000e+00> : vector<128xf32>
    %133 = vector.multi_reduction <add>, %33, %cst_65 [0] : vector<8x128xf32> to vector<128xf32>
    %134 = vector.shape_cast %133 : vector<128xf32> to vector<1x128xf32>
    %135 = tpu.concatenate %40, %51, %62, %73, %84, %95, %106, %117, %128, %44, %55, %66, %77, %88, %99, %110 in 0 : vector<1x128xf32>, vector<1x128xf32>, vector<1x128xf32>, vector<1x128xf32>, vector<1x128xf32>, vector<1x128xf32>, vector<1x128xf32>, vector<1x128xf32>, vector<1x128xf32>, vector<1x128xf32>, vector<1x128xf32>, vector<1x128xf32>, vector<1x128xf32>, vector<1x128xf32>, vector<1x128xf32>, vector<1x128xf32> -> vector<16x128xf32>
    %136 = tpu.concatenate %121, %132, %134 in 0 : vector<1x128xf32>, vector<1x128xf32>, vector<1x128xf32> -> vector<3x128xf32>
    %137 = tpu.concatenate %135, %136 in 0 : vector<16x128xf32>, vector<3x128xf32> -> vector<19x128xf32>
    %c0_66 = arith.constant 0 : index
    %c0_67 = arith.constant 0 : index
    %c0_68 = arith.constant 0 : index
    %138 = vector.load %arg3[%c0_66, %c0_67, %c0_68] : memref<1x19x128xf32, #tpu.memory_space<vmem>>, vector<1x19x128xf32>
    %139 = vector.shape_cast %138 : vector<1x19x128xf32> to vector<19x128xf32>
    %140 = vector.shape_cast %137 : vector<19x128xf32> to vector<1x19x128xf32>
    tpu.vector_store %arg3[%c0_66, %c0_67, %c0_68], %140 {strides = array<i32>} : memref<1x19x128xf32, #tpu.memory_space<vmem>>, vector<1x19x128xf32>,
    return
  }
  func.func @transform_0(%arg0: i32) -> (i32, i32) {
    %c0_i32 = arith.constant 0 : i32
    %c0_i32_0 = arith.constant 0 : i32
    return %arg0, %c0_i32 : i32, i32
  }
  func.func @transform_1(%arg0: i32) -> (i32, i32) {
    %c0_i32 = arith.constant 0 : i32
    %c0_i32_0 = arith.constant 0 : i32
    return %arg0, %c0_i32 : i32, i32
  }
  func.func @transform_2(%arg0: i32) -> (i32, i32, i32) {
    %c0_i32 = arith.constant 0 : i32
    %c0_i32_0 = arith.constant 0 : i32
    %c0_i32_1 = arith.constant 0 : i32
    return %arg0, %c0_i32, %c0_i32_0 : i32, i32, i32
  }
}

</mosaic_0001>

<bundles_post_ra>
// kernel: ghm_forward.1
= control target key start
LH: loop header
LB: loop body
LE: loop exit
PB: predicated region body
PF: predicated region fallthrough
CT: control target
= control target key end

     0   :  { %s468_s9 = smov 0   ;;  %s598_s0 = inlined_call_operand.vmem [shape: f32[18,128], index: 0, kind: input, shape index: {}]   ;;  %s599_s1 = inlined_call_operand.vmem [shape: f32[18,128], index: 1, kind: input, shape index: {}]   ;;  %s600_s2 = inlined_call_operand.vmem [shape: f32[3,19,128], index: 2, kind: output, shape index: {}]  }
   0x1 LB: > { %s419_s10 = sadd.s32 4294967295, %s450_s9   ;;  %p423_p0 = scmp.ge.s32.totalorder %s450_s9, 1  ;;  %s450_s9 = sphi %s468_s9, %s12_s9  }
   0x2   : > { %p120_p1 = scmp.lt.s32.totalorder %s450_s9, 4 }
   0x4   : > { %p121_p2 = pnand %p423_p0, %p120_p1 }
   0x5   : > { %p145_p3 = scmp.lt.s32.totalorder (!%p121_p2), %s419_s10, 2  ;;  %s427_s19 = sshll.u32 (!%p121_p2), %s419_s10, 3  ;;  %v177_v6 = vlaneseq (!%p121_p2)  ;;  %v452_v21 = vmov (!%p121_p2), 0.0   ;;  %vm326_vm8 = vcmask (!%p121_p2), 1040384   ;;  %vm328_vm10 = vcmask (!%p121_p2), 1041408  }
   0x6   : > { %124 = sbr.rel (%p121_p2) target bundleno = 90 (0x5a), region = 28  ;;  %s180_s20 = ssub.s32 (!%p121_p2), 18, %s427_s19  ;;  %vm330_vm11 = vcmask (!%p121_p2), 1042432   ;;  %vm332_vm12 = vcmask (!%p121_p2), 1043456   ;;  %vm334_vm13 = vcmask (!%p121_p2), 1044480   ;;  %vm336_vm15 = vcmask (!%p121_p2), 1045504  }
   0x7   : > { %v178_v11 = vshrl.u32 (!%p121_p2), %v177_v6, 7  ;;  %v181_v13 = vstv (!%p121_p2), %s180_s20 }
   0x9   : > { %vm485_vm0 = vcmp.lt.s32.totalorder (!%p121_p2), %v178_v11, %v181_v13 }
   0xd   : > { %s476_s11 = scalar_select %p145_p3, %s419_s10, 2 }
   0xf   : > { %s424_s12 = sshll.u32 %s476_s11, 3  ;;  %s430_s21 = smul.u32 24, %s476_s11 }
  0x10   : > { %s148_s15 = scalar_lea.vmem %s598_s0, %s424_s12  ;;  %s152_s18 = scalar_lea.vmem %s599_s1, %s424_s12 }
  0x11   : > { %v158_v0 = vld [vmem:[%s148_s15] sm:$0xff]  ;;  %s157_s24 = scalar_lea.vmem %s600_s2, %s430_s21 }
  0x12   : > { %v160_v1 = vmul.f32 0.5, %v158_v0  ;;  %v159_v5 = vld [vmem:[%s152_s18] sm:$0xff]  ;;  %v164_v14 = vmax.f32 %v158_v0, 0.0 }
  0x13   : > { %v165_v15 = vmul.f32 %v159_v5, %v158_v0 }
  0x14   : > { %440 = vtanh.f32 %v160_v1 }
  0x15   : > { %v166_v19 = vsub.f32 %v164_v14, %v165_v15 }
  0x1e   : > { %v441_v2 = vpop.eup %440 }
  0x1f   : > { %v162_v3 = vmul.f32 0.5, %v441_v2  ;;  %v167_v4 = vand.u32 2147483647, %v441_v2 }
  0x21   : > { %v163_v7 = vadd.f32 0.5, %v162_v3  ;;  %v168_v8 = vmul.f32 0.5, %v167_v4 }
  0x23   : > { %v169_v9 = vadd.f32 0.5, %v168_v8  ;;  %v173_v10 = vsub.f32 %v163_v7, %v159_v5 }
  0x25   : > { %442 = vlog2.f32 %v169_v9  ;;  %v174_v12 = vand.u32 2147483647, %v173_v10 }
  0x27   : > { %v175_v16 = vmul.f32 9.9999, %v174_v12 }
  0x29   : > { %v176_v18 = vfloor.f32 %v175_v16 }
  0x2b   : > { %v491_v20 = vsel %vm485_vm0, %v176_v18, -1.0 }
  0x2c   : > { %vm185_vm1 = vcmp.eq.f32.partialorder %v491_v20, 0.0  ;;  %vm200_vm2 = vcmp.eq.f32.partialorder %v491_v20, 1.0  ;;  %vm215_vm3 = vcmp.eq.f32.partialorder %v491_v20, 2.0  ;;  %vm230_vm4 = vcmp.eq.f32.partialorder %v491_v20, 3.0 }
  0x2d   : > { %v186_v22 = vsel %vm185_vm1, 1.0, %v452_v21  ;;  %v201_v23 = vsel %vm200_vm2, 1.0, %v452_v21  ;;  %v216_v24 = vsel %vm215_vm3, 1.0, %v452_v21  ;;  %v231_v25 = vsel %vm230_vm4, 1.0, %v452_v21 }
  0x2e   : > { %v187_v26 = vrot.slane %v186_v22, 4  ;;  %v202_v27 = vrot.slane %v201_v23, 4  ;;  %v217_v28 = vrot.slane %v216_v24, 4  ;;  %v232_v29 = vrot.slane %v231_v25, 4 }
  0x2f   : > { %v443_v30 = vpop.eup %442  ;;  %vm245_vm5 = vcmp.eq.f32.partialorder %v491_v20, 4.0  ;;  %vm260_vm6 = vcmp.eq.f32.partialorder %v491_v20, 5.0  ;;  %vm275_vm7 = vcmp.eq.f32.partialorder %v491_v20, 6.0  ;;  %vm290_vm9 = vcmp.eq.f32.partialorder %v491_v20, 7.0 }
  0x30   : > { %v171_v31 = vmul.f32 0.6931472, %v443_v30  ;;  %v188_v32 = vadd.f32 %v187_v26, %v186_v22  ;;  %v203_v33 = vadd.f32 %v202_v27, %v201_v23  ;;  %v218_v34 = vadd.f32 %v217_v28, %v216_v24 }
  0x31   : > { %v233_v35 = vadd.f32 %v232_v29, %v231_v25  ;;  %v246_v39 = vsel %vm245_vm5, 1.0, %v452_v21  ;;  %v261_v40 = vsel %vm260_vm6, 1.0, %v452_v21  ;;  %v276_v55 = vsel %vm275_vm7, 1.0, %v452_v21 }
  0x32   : > { %v172_v36 = vsub.f32 %v166_v19, %v171_v31  ;;  %v189_v37 = vrot.slane %v188_v32, 2  ;;  %v204_v38 = vrot.slane %v203_v33, 2  ;;  %v219_v43 = vrot.slane %v218_v34, 2 }
  0x33   : > { %v234_v44 = vrot.slane %v233_v35, 2  ;;  %v247_v51 = vrot.slane %v246_v39, 4  ;;  %v262_v54 = vrot.slane %v261_v40, 4  ;;  %v277_v18 = vrot.slane %v276_v55, 4 }
  0x34   : > { %v520_v41 = vsel %vm485_vm0, %v172_v36, 0.0  ;;  %v190_v42 = vadd.f32 %v189_v37, %v188_v32  ;;  %v205_v46 = vadd.f32 %v204_v38, %v203_v33  ;;  %v220_v58 = vadd.f32 %v219_v43, %v218_v34 }
  0x35   : > { %v193_v45 = vsel %vm185_vm1, %v520_v41, 0.0  ;;  %v208_v47 = vsel %vm200_vm2, %v520_v41, 0.0  ;;  %v223_v48 = vsel %vm215_vm3, %v520_v41, 0.0  ;;  %v238_v53 = vsel %vm230_vm4, %v520_v41, 0.0 }
  0x36   : > { %v194_v49 = vrot.slane %v193_v45, 4  ;;  %v209_v50 = vrot.slane %v208_v47, 4  ;;  %v224_v52 = vrot.slane %v223_v48, 4  ;;  %v235_v59 = vadd.f32 %v234_v44, %v233_v35 }
  0x37   : > { %v191_v60 = vrot.slane %v190_v42, 1  ;;  %v206_v61 = vrot.slane %v205_v46, 1  ;;  %v239_v63 = vrot.slane %v238_v53, 4  ;;  %v248_v2 = vadd.f32 %v247_v51, %v246_v39 }
  0x38   : > { %v195_v56 = vadd.f32 %v194_v49, %v193_v45  ;;  %v210_v57 = vadd.f32 %v209_v50, %v208_v47  ;;  %v225_v62 = vadd.f32 %v224_v52, %v223_v48  ;;  %v253_v3 = vsel %vm245_vm5, %v520_v41, 0.0 }
  0x39   : > { %v240_v5 = vadd.f32 %v239_v63, %v238_v53  ;;  %v254_v6 = vrot.slane %v253_v3, 4  ;;  %v263_v7 = vadd.f32 %v262_v54, %v261_v40  ;;  %v221_v10 = vrot.slane %v220_v58, 1 }
  0x3a   : > { %v196_v0 = vrot.slane %v195_v56, 2  ;;  %v211_v1 = vrot.slane %v210_v57, 2  ;;  %v226_v4 = vrot.slane %v225_v62, 2  ;;  %v249_v11 = vrot.slane %v248_v2, 2 }
  0x3b   : > { %v236_v13 = vrot.slane %v235_v59, 1  ;;  %v255_v14 = vadd.f32 %v254_v6, %v253_v3  ;;  %v268_v15 = vsel %vm260_vm6, %v520_v41, 0.0  ;;  %v241_v16 = vrot.slane %v240_v5, 2 }
  0x3c   : > { %v197_v8 = vadd.f32 %v196_v0, %v195_v56  ;;  %v212_v9 = vadd.f32 %v211_v1, %v210_v57  ;;  %v227_v12 = vadd.f32 %v226_v4, %v225_v62  ;;  %v264_v17 = vrot.slane %v263_v7, 2 }
  0x3d   : > { %v250_v23 = vadd.f32 %v249_v11, %v248_v2  ;;  %v192_v24 = vadd.f32 %v191_v60, %v190_v42  ;;  %v207_v25 = vadd.f32 %v206_v61, %v205_v46  ;;  %v269_v26 = vrot.slane %v268_v15, 4 }
  0x3e   : > { %v198_v19 = vrot.slane %v197_v8, 1  ;;  %v213_v22 = vrot.slane %v212_v9, 1  ;;  %v222_v27 = vadd.f32 %v221_v10, %v220_v58  ;;  %v228_v28 = vrot.slane %v227_v12, 1 }
  0x3f   : > { %v237_v29 = vadd.f32 %v236_v13, %v235_v59  ;;  %v256_v30 = vrot.slane %v255_v14, 2  ;;  %v544_v31 = vadd.f32 %v241_v16, %v240_v5  ;;  %v265_v32 = vadd.f32 %v264_v17, %v263_v7 }
  0x40   : > { %v278_v33 = vadd.f32 %v277_v18, %v276_v55  ;;  %v283_v34 = vsel %vm275_vm7, %v520_v41, 0.0  ;;  %v549_v35 = vadd.f32 %v198_v19, %v197_v8  ;;  %v551_v36 = vadd.f32 %v213_v22, %v212_v9 }
  0x41   : > { %v251_v37 = vrot.slane %v250_v23, 1  ;;  %v284_v38 = vrot.slane %v283_v34, 4  ;;  %v270_v39 = vadd.f32 %v269_v26, %v268_v15  ;;  %v291_v42 = vsel %vm290_vm9, 1.0, %v452_v21 }
  0x42   : > { %v279_v40 = vrot.slane %v278_v33, 2  ;;  %v298_v43 = vsel %vm290_vm9, %v520_v41, 0.0  ;;  %v559_v44 = vadd.f32 %v228_v28, %v227_v12  ;;  %v561_v45 = vadd.f32 %v256_v30, %v255_v14 }
  0x43   : > { %v292_v46 = vrot.slane %v291_v42, 4  ;;  %v299_v47 = vrot.slane %v298_v43, 4  ;;  %v285_v49 = vadd.f32 %v284_v38, %v283_v34  ;;  %vm305_vm14 = vcmp.eq.f32.partialorder %v491_v20, 8.0 }
  0x44   : > { %v280_v48 = vadd.f32 %v279_v40, %v278_v33  ;;  %v320_v50 = vrot.slane %v520_v41, 4  ;;  %v266_v51 = vrot.slane %v265_v32, 1  ;;  %v306_v54 = vsel %vm305_vm14, 1.0, %v452_v21 }
  0x45   : > { %v293_v52 = vadd.f32 %v292_v46, %v291_v42  ;;  %v300_v53 = vadd.f32 %v299_v47, %v298_v43  ;;  %vm338_vm0 = vcmask 1046528   ;;  %v252_v55 = vadd.f32 %v251_v37, %v250_v23 }
  0x46   : > { %v271_v56 = vrot.slane %v270_v39, 2  ;;  %v307_v57 = vrot.slane %v306_v54, 4  ;;  %v313_v58 = vsel %vm305_vm14, %v520_v41, 0.0  ;;  %v281_v59 = vrot.slane %v280_v48, 1 }
  0x47   : > { %v294_v60 = vrot.slane %v293_v52, 2  ;;  %v301_v61 = vrot.slane %v300_v53, 2  ;;  %v314_v62 = vrot.slane %v313_v58, 4  ;;  %v286_v20 = vrot.slane %v285_v49, 2 }
  0x48   : > { %v308_v63 = vadd.f32 %v307_v57, %v306_v54  ;;  %v321_v0 = vadd.f32 %v320_v50, %v520_v41  ;;  %v327_v1 = vsel %vm326_vm8, %v192_v24, %v207_v25  ;;  %v267_v2 = vadd.f32 %v266_v51, %v265_v32 }
  0x49   : > { %v295_v3 = vadd.f32 %v294_v60, %v293_v52  ;;  %v302_v21 = vadd.f32 %v301_v61, %v300_v53  ;;  %v315_v4 = vadd.f32 %v314_v62, %v313_v58  ;;  %v272_v5 = vadd.f32 %v271_v56, %v270_v39 }
  0x4a   : > { %v309_v6 = vrot.slane %v308_v63, 2  ;;  %v322_v7 = vrot.slane %v321_v0, 2  ;;  %v329_v8 = vsel %vm328_vm10, %v327_v1, %v222_v27  ;;  %v282_v9 = vadd.f32 %v281_v59, %v280_v48 }
  0x4b   : > { %v296_v10 = vrot.slane %v295_v3, 1  ;;  %v303_v11 = vrot.slane %v302_v21, 1  ;;  %v316_v12 = vrot.slane %v315_v4, 2  ;;  %v287_v13 = vadd.f32 %v286_v20, %v285_v49 }
  0x4c   : > { %v310_v14 = vadd.f32 %v309_v6, %v308_v63  ;;  %v323_v15 = vadd.f32 %v322_v7, %v321_v0  ;;  %v331_v41 = vsel %vm330_vm11, %v329_v8, %v237_v29  ;;  %v243_v16 = vrot.slane %v544_v31, 1 }
  0x4d   : > { %v297_v17 = vadd.f32 %v296_v10, %v295_v3  ;;  %v317_v18 = vadd.f32 %v316_v12, %v315_v4  ;;  %v333_v19 = vsel %vm332_vm12, %v331_v41, %v252_v55  ;;  %v258_v22 = vrot.slane %v561_v45, 1 }
  0x4e   : > { %v311_v23 = vrot.slane %v310_v14, 1  ;;  %v324_v24 = vrot.slane %v323_v15, 1  ;;  %v335_v25 = vsel %vm334_vm13, %v333_v19, %v267_v2  ;;  %v273_v26 = vrot.slane %v272_v5, 1 }
  0x4f   : > { %v304_v27 = vadd.f32 %v303_v11, %v302_v21  ;;  %v318_v28 = vrot.slane %v317_v18, 1  ;;  %v337_v29 = vsel %vm336_vm15, %v335_v25, %v282_v9  ;;  %v288_v30 = vrot.slane %v287_v13, 1 }
  0x50   : > { %v312_v32 = vadd.f32 %v311_v23, %v310_v14  ;;  %v325_v33 = vadd.f32 %v324_v24, %v323_v15  ;;  %v339_v34 = vsel %vm338_vm0, %v337_v29, %v297_v17  ;;  %v244_v37 = vadd.f32 %v243_v16, %v544_v31 }
  0x51   : > { %v319_v38 = vadd.f32 %v318_v28, %v317_v18  ;;  %349 = vst [vmem:[%s157_s24] sm:$0xff] %v339_v34  ;;  %v259_v39 = vadd.f32 %v258_v22, %v561_v45  ;;  %v274_v42 = vadd.f32 %v273_v26, %v272_v5  ;;  %v289_v47 = vadd.f32 %v288_v30, %v287_v13 }
  0x52   : > { %v340_v40 = vsel %vm326_vm8, %v312_v32, %v549_v35 }
  0x53   : > { %v341_v43 = vsel %vm328_vm10, %v340_v40, %v551_v36  ;;  %v347_v46 = vsel %vm326_vm8, %v304_v27, %v319_v38 }
  0x54   : > { %v342_v48 = vsel %vm330_vm11, %v341_v43, %v559_v44  ;;  %v348_v49 = vsel %vm328_vm10, %v347_v46, %v325_v33 }
  0x55   : > { %v343_v31 = vsel %vm332_vm12, %v342_v48, %v244_v37  ;;  %351 = vst [vmem:[%s157_s24 + $0x10] sm:$0x7] %v348_v49 }
  0x56   : > { %v344_v45 = vsel %vm334_vm13, %v343_v31, %v259_v39 }
  0x57   : > { %v345_v50 = vsel %vm336_vm15, %v344_v45, %v274_v42 }
  0x58   : > { %v346_v35 = vsel %vm338_vm0, %v345_v50, %v289_v47 }
  0x59   : > { %350 = vst [vmem:[%s157_s24 + $0x8] sm:$0xff] %v346_v35 }
  0x5a PF: > { %s12_s9 = sadd.s32 1, %s450_s9  }
  0x5b   : > { %p9_p4 = scmp.ge.s32.totalorder %s12_s9, 5  }
  0x5d   :  { %11 = sbr.rel (!%p9_p4) target bundleno = 1 (0x1), region = 61 }

</bundles_post_ra>
